<compile_context>
chip_gen: v7x
topology: tpu7x:2x2x1
jax: 0.10.0
libtpu: 0.0.40
codegen_flags: <defaults>
</compile_context>

<pallas_src>
import functools

import jax
import jax.numpy as jnp
from jax.experimental import pallas as pl
from jax.experimental.pallas import tpu as pltpu


# ---------------------------------------------------------------------------
# Small helpers
# ---------------------------------------------------------------------------
def _cdiv(a, b):
    return (a + b - 1) // b


def _round_up(a, b):
    return _cdiv(a, b) * b


def _next_pow2(x):
    p = 1
    while p < x:
        p *= 2
    return p


_TARGET_BLOCK_BYTES = 8 << 20   # ~8 MiB streamed blocks (review: raise from 2 MiB)
_N_STRIPES = 2                  # dual-TC split of the stats pass (v7x); harmless on 1-TC chips


def _vmem_budget():
    """Generation-aware scoped-VMEM budget (bytes)."""
    cap = 64 << 20                                 # conservative default (v7x physical)
    try:
        info_fn = getattr(pltpu, "get_tpu_info", None)
        if info_fn is not None:
            cap = int(info_fn().vmem_capacity_bytes)
    except Exception:
        cap = 64 << 20
    # Leave headroom: 3/4 of physical, capped at 100 MiB (v5e/v6e have 128 MiB).
    return min(cap * 3 // 4, 100 << 20)


def _pick_tiles(rows_needed, row_bytes, vmem_limit, block_rows, min_tiles, tile_quantum):
    """Pick (block_rows, num_tiles) with block_rows a multiple of 8 and
    num_tiles a multiple of tile_quantum, avoiding gross over-padding."""
    if block_rows is None:
        target = min(_TARGET_BLOCK_BYTES, vmem_limit // 6)
        block_rows = max(8, (target // row_bytes) // 8 * 8)
    tiles = max(min_tiles, _cdiv(rows_needed, block_rows))
    tiles = _round_up(tiles, tile_quantum)
    block_rows = _round_up(_cdiv(rows_needed, tiles), 8)
    return int(block_rows), int(tiles)


def _to_flat(xp, rows):
    """(N, C_pad) row-major -> zero-padded (rows, 128) lane-dense slab."""
    n, c_pad = xp.shape
    flat = xp.reshape(n * c_pad)
    pad = rows * 128 - n * c_pad
    if pad:
        flat = jnp.pad(flat, (0, pad))
    return flat.reshape(rows, 128)


def _from_flat(out_flat, n, c, c_pad):
    out = out_flat.reshape(-1)[: n * c_pad].reshape(n, c_pad)
    return out if c_pad == c else out[:, :c]


# ---------------------------------------------------------------------------
# Kernels
# ---------------------------------------------------------------------------
def _fused_flat_kernel(x_ref, w_ref, b_ref, o_ref, *, c_pad, n_elems, inv_n, eps):
    """VMEM-resident fast path: whole (rows, 128) slab in VMEM.

    One HBM read + one HBM write.  Variance uses the exact two-pass (centered)
    form computed entirely in VMEM -> no E[x^2]-E[x]^2 cancellation.
    """
    x = x_ref[...].astype(jnp.float32)                       # (rows, 128)
    rows = x.shape[0]

    # Validity mask for the zero tail padding (flat element index < n_elems).
    row_i = jax.lax.broadcasted_iota(jnp.int32, (rows, 128), 0)
    lane_i = jax.lax.broadcasted_iota(jnp.int32, (rows, 128), 1)
    full_rows = n_elems // 128
    rem = n_elems % 128
    valid = (row_i < full_rows) | ((row_i == full_rows) & (lane_i < rem))

    # Lane-group-sum matrix: lanes l, l' hold the same channel iff
    # l % c_pad == l' % c_pad.  One tiny MXU matmul turns per-lane partial
    # sums into per-channel sums broadcast back over the 128-lane pattern.
    gr = jax.lax.broadcasted_iota(jnp.int32, (128, 128), 0) % c_pad
    gc = jax.lax.broadcasted_iota(jnp.int32, (128, 128), 1) % c_pad
    gmat = (gr == gc).astype(jnp.float32)

    # Pass 1 (in VMEM): per-channel mean.  Tail padding is exact zeros, so the
    # raw sums are unaffected.
    lane_sum = jnp.sum(x, axis=0, keepdims=True)             # (1, 128)
    mean = jnp.dot(lane_sum, gmat, preferred_element_type=jnp.float32) * inv_n

    # Pass 2 (in VMEM): exact centered variance (mask the padding, which is
    # nonzero once shifted by the mean).
    d = jnp.where(valid, x - mean, 0.0)
    lane_sq = jnp.sum(d * d, axis=0, keepdims=True)
    var = jnp.dot(lane_sq, gmat, preferred_element_type=jnp.float32) * inv_n

    scale = w_ref[...] * jax.lax.rsqrt(var + eps)            # (1, 128)
    shift = b_ref[...] - mean * scale
    o_ref[...] = (x * scale + shift).astype(o_ref.dtype)


def _flat_stats_kernel(x_ref, pilot_ref, cnt_ref, sumd_ref, sqd_ref,
                       pilot_sc, cnt_sc, sumd_sc, sqd_sc,
                       *, n_elems, block_rows, tiles_per_stripe):
    """Per-stripe, per-lane partial statistics over the flat (rows, 128) slab.

    Grid = (n_stripes ["parallel"], tiles_per_stripe ["arbitrary"]).  Each
    stripe keeps lane-wide (1, 128) accumulators (VPU adds + one sublane
    reduce per tile; no per-tile cross-lane work) of pilot-shifted sums where
    pilot = the stripe's first-tile per-lane mean (cheap shift, robust
    variance).  Per-channel regroup + stripe combine happen in host glue so
    the two stripes can run on separate TensorCores on v7x.
    """
    s = pl.program_id(0)
    i = pl.program_id(1)
    x = x_ref[...].astype(jnp.float32)                       # (block_rows, 128)

    @pl.when(i == 0)
    def _():
        # Any finite shift is valid; the first tile's per-lane mean is close
        # enough to condition the sum of squares.
        pilot_sc[...] = jnp.sum(x, axis=0, keepdims=True) * (1.0 / block_rows)
        cnt_sc[...] = jnp.zeros_like(cnt_sc)
        sumd_sc[...] = jnp.zeros_like(sumd_sc)
        sqd_sc[...] = jnp.zeros_like(sqd_sc)

    # Validity mask for the zero tail padding (global flat element index).
    row0 = (s * tiles_per_stripe + i) * block_rows
    row_i = row0 + jax.lax.broadcasted_iota(jnp.int32, x.shape, 0)
    lane_i = jax.lax.broadcasted_iota(jnp.int32, x.shape, 1)
    full_rows = n_elems // 128
    rem = n_elems % 128
    valid = (row_i < full_rows) | ((row_i == full_rows) & (lane_i < rem))

    d = jnp.where(valid, x - pilot_sc[...], 0.0)
    cnt_sc[...] += jnp.sum(valid.astype(jnp.float32), axis=0, keepdims=True)
    sumd_sc[...] += jnp.sum(d, axis=0, keepdims=True)
    sqd_sc[...] += jnp.sum(d * d, axis=0, keepdims=True)

    @pl.when(i == pl.num_programs(1) - 1)
    def _():
        pilot_ref[...] = pilot_sc[...]
        cnt_ref[...] = cnt_sc[...]
        sumd_ref[...] = sumd_sc[...]
        sqd_ref[...] = sqd_sc[...]


def _scale_shift_kernel(x_ref, scale_ref, shift_ref, o_ref):
    """Streaming FMA: out = x * scale + shift, per-channel params broadcast."""
    x = x_ref[...].astype(jnp.float32)
    o_ref[...] = (x * scale_ref[...] + shift_ref[...]).astype(o_ref.dtype)


def _wide_stats_kernel(x_ref, w_ref, b_ref, scale_ref, shift_ref,
                       pilot_sc, sumd_sc, sqd_sc,
                       *, n_rows, block_rows, inv_n, eps):
    """Per-channel statistics for the channels-on-lanes path (C > 128).

    Pilot-shifted accumulation + row mask for the zero-padded tail; scale and
    shift are fused into the finalize block (no host glue for this path)."""
    i = pl.program_id(0)
    x = x_ref[...].astype(jnp.float32)                       # (block_rows, c_pad)

    @pl.when(i == 0)
    def _():
        pilot_sc[...] = jnp.sum(x, axis=0, keepdims=True) * (1.0 / block_rows)
        sumd_sc[...] = jnp.zeros_like(sumd_sc)
        sqd_sc[...] = jnp.zeros_like(sqd_sc)

    row = i * block_rows + jax.lax.broadcasted_iota(jnp.int32, x.shape, 0)
    valid = row < n_rows
    d = jnp.where(valid, x - pilot_sc[...], 0.0)
    sumd_sc[...] += jnp.sum(d, axis=0, keepdims=True)
    sqd_sc[...] += jnp.sum(d * d, axis=0, keepdims=True)

    @pl.when(i == pl.num_programs(0) - 1)
    def _():
        mean_d = sumd_sc[...] * inv_n
        mean = pilot_sc[...] + mean_d
        var = jnp.maximum(sqd_sc[...] * inv_n - mean_d * mean_d, 0.0)
        scale = w_ref[...] * jax.lax.rsqrt(var + eps)
        scale_ref[...] = scale
        shift_ref[...] = b_ref[...] - mean * scale


# ---------------------------------------------------------------------------
# Wrappers
# ---------------------------------------------------------------------------
def _forward_flat(x, w, b, eps, vmem_limit, block_rows, force_tiled):
    """C <= 128: lane-dense flat-slab path (no transposes, native layout)."""
    n, c = x.shape
    c_pad = min(128, _next_pow2(c))              # a divisor of 128
    r = 128 // c_pad
    itemsize = jnp.dtype(x.dtype).itemsize

    # Zero-pad channels (stats-safe) to a divisor of 128.  A caller that keeps
    # features in the flat (rows, 128) layout pays no relayout at all.
    xp = x if c_pad == c else jnp.pad(x, ((0, 0), (0, c_pad - c)))
    w_pad = w if c_pad == c else jnp.pad(w, (0, c_pad - c), constant_values=1.0)
    b_pad = b if c_pad == c else jnp.pad(b, (0, c_pad - c))
    w128 = jnp.tile(w_pad, r).reshape(1, 128)
    b128 = jnp.tile(b_pad, r).reshape(1, 128)

    n_elems = n * c_pad
    rows_needed = _cdiv(n_elems, 128)

    # ---- Fast path: whole slab resident in VMEM (single fused kernel,
    # ---- 1 HBM read + 1 HBM write, exact two-pass variance, no host glue).
    rows_fast = _round_up(rows_needed, 8)
    slab_in = rows_fast * 128 * itemsize
    slab_f32 = rows_fast * 128 * 4
    vmem_estimate = 2 * slab_in + 2 * slab_f32   # in + out + f32 temporaries
    if (not force_tiled) and vmem_estimate <= (vmem_limit * 3) // 5:
        x_flat = _to_flat(xp, rows_fast)
        out_flat = pl.pallas_call(
            functools.partial(_fused_flat_kernel, c_pad=c_pad, n_elems=n_elems,
                              inv_n=1.0 / n, eps=eps),
            out_shape=jax.ShapeDtypeStruct((rows_fast, 128), x.dtype),
            compiler_params=pltpu.CompilerParams(vmem_limit_bytes=vmem_limit),
        )(x_flat, w128, b128)
        return _from_flat(out_flat, n, c, c_pad)

    # ---- Tiled path: stats pass (+ tiny glue) + streaming normalize pass.
    # >= 2 tiles per stripe so each stripe's pilot tile is padding-free.
    blk, tiles = _pick_tiles(rows_needed, 128 * itemsize, vmem_limit,
                             block_rows, 2 * _N_STRIPES, _N_STRIPES)
    tiles_per_stripe = tiles // _N_STRIPES
    rows_pad = tiles * blk
    x_flat = _to_flat(xp, rows_pad)

    stats_out_spec = pl.BlockSpec((1, 128), lambda s, i: (s, 0))
    pilot, cnt, sumd, sqd = pl.pallas_call(
        functools.partial(_flat_stats_kernel, n_elems=n_elems, block_rows=blk,
                          tiles_per_stripe=tiles_per_stripe),
        out_shape=tuple(jax.ShapeDtypeStruct((_N_STRIPES, 128), jnp.float32)
                        for _ in range(4)),
        grid_spec=pltpu.PrefetchScalarGridSpec(
            num_scalar_prefetch=0,
            grid=(_N_STRIPES, tiles_per_stripe),
            in_specs=[pl.BlockSpec((blk, 128),
                                   lambda s, i: (s * tiles_per_stripe + i, 0))],
            out_specs=(stats_out_spec,) * 4,
            scratch_shapes=[pltpu.VMEM((1, 128), jnp.float32) for _ in range(4)],
        ),
        compiler_params=pltpu.CompilerParams(
            dimension_semantics=("parallel", "arbitrary"),
            vmem_limit_bytes=vmem_limit),
    )(x_flat)

    # Host glue (C-sized): regroup per-lane stats to per-channel and merge the
    # stripes / lane groups with the grouped-variance decomposition (kept out
    # of the kernel so the stripes can run on separate TensorCores on v7x).
    def regroup(a):
        return a.reshape(_N_STRIPES * r, c_pad)

    cnt_g = regroup(cnt)
    safe = jnp.maximum(cnt_g, 1.0)
    mean_g = regroup(pilot) + regroup(sumd) / safe
    m2_g = jnp.maximum(regroup(sqd) - regroup(sumd) ** 2 / safe, 0.0)
    n_tot = jnp.maximum(jnp.sum(cnt_g, axis=0), 1.0)          # == n for real channels
    mean_c = jnp.sum(cnt_g * mean_g, axis=0) / n_tot
    var_c = jnp.sum(m2_g + cnt_g * (mean_g - mean_c) ** 2, axis=0) / n_tot

    scale_c = w_pad * jax.lax.rsqrt(var_c + eps)
    shift_c = b_pad - mean_c * scale_c
    scale128 = jnp.tile(scale_c, r).reshape(1, 128)
    shift128 = jnp.tile(shift_c, r).reshape(1, 128)

    # Pass 2: memory-bound streaming FMA, megacore-sharded over row tiles.
    out_flat = pl.pallas_call(
        _scale_shift_kernel,
        out_shape=jax.ShapeDtypeStruct((rows_pad, 128), x.dtype),
        grid_spec=pltpu.PrefetchScalarGridSpec(
            num_scalar_prefetch=0,
            grid=(tiles,),
            in_specs=[pl.BlockSpec((blk, 128), lambda i: (i, 0)),
                      pl.BlockSpec((1, 128), lambda i: (0, 0)),
                      pl.BlockSpec((1, 128), lambda i: (0, 0))],
            out_specs=pl.BlockSpec((blk, 128), lambda i: (i, 0)),
        ),
        compiler_params=pltpu.CompilerParams(
            dimension_semantics=("parallel",), vmem_limit_bytes=vmem_limit),
    )(x_flat, scale128, shift128)
    return _from_flat(out_flat, n, c, c_pad)


def _forward_wide(x, w, b, eps, vmem_limit, block_rows):
    """C > 128: channels-on-lanes path, C padded to a multiple of 128."""
    n, c = x.shape
    c_pad = _round_up(c, 128)
    itemsize = jnp.dtype(x.dtype).itemsize
    blk, tiles = _pick_tiles(n, c_pad * itemsize, vmem_limit, block_rows, 1, 1)
    n_pad = blk * tiles

    xp = jnp.pad(x, ((0, n_pad - n), (0, c_pad - c)))
    w_pad = jnp.pad(w, (0, c_pad - c), constant_values=1.0).reshape(1, c_pad)
    b_pad = jnp.pad(b, (0, c_pad - c)).reshape(1, c_pad)

    # Pass 1: per-channel scale/shift, fused into the stats finalize (no glue).
    scale, shift = pl.pallas_call(
        functools.partial(_wide_stats_kernel, n_rows=n, block_rows=blk,
                          inv_n=1.0 / n, eps=eps),
        out_shape=(jax.ShapeDtypeStruct((1, c_pad), jnp.float32),
                   jax.ShapeDtypeStruct((1, c_pad), jnp.float32)),
        grid_spec=pltpu.PrefetchScalarGridSpec(
            num_scalar_prefetch=0,
            grid=(tiles,),
            in_specs=[pl.BlockSpec((blk, c_pad), lambda i: (i, 0)),
                      pl.BlockSpec((1, c_pad), lambda i: (0, 0)),
                      pl.BlockSpec((1, c_pad), lambda i: (0, 0))],
            out_specs=(pl.BlockSpec((1, c_pad), lambda i: (0, 0)),
                       pl.BlockSpec((1, c_pad), lambda i: (0, 0))),
            scratch_shapes=[pltpu.VMEM((1, c_pad), jnp.float32)
                            for _ in range(3)],
        ),
        compiler_params=pltpu.CompilerParams(
            dimension_semantics=("arbitrary",), vmem_limit_bytes=vmem_limit),
    )(xp, w_pad, b_pad)

    # Pass 2: streaming FMA.
    out = pl.pallas_call(
        _scale_shift_kernel,
        out_shape=jax.ShapeDtypeStruct((n_pad, c_pad), x.dtype),
        grid_spec=pltpu.PrefetchScalarGridSpec(
            num_scalar_prefetch=0,
            grid=(tiles,),
            in_specs=[pl.BlockSpec((blk, c_pad), lambda i: (i, 0)),
                      pl.BlockSpec((1, c_pad), lambda i: (0, 0)),
                      pl.BlockSpec((1, c_pad), lambda i: (0, 0))],
            out_specs=pl.BlockSpec((blk, c_pad), lambda i: (i, 0)),
        ),
        compiler_params=pltpu.CompilerParams(
            dimension_semantics=("parallel",), vmem_limit_bytes=vmem_limit),
    )(xp, scale, shift)
    # TODO(synk): add a fused single-read VMEM-resident fast path and a dual-TC
    # stripe split for this C > 128 branch as well.
    return out[:n, :c]


def minkowski_batch_norm(x, weight, bias, eps=1e-5, *, block_rows=None,
                         force_tiled=False):
    """Training-mode BatchNorm1d forward over sparse features.

    x: (N, C) feature matrix (input.F), weight/bias: (C,).  Returns (N, C).
    `block_rows` / `force_tiled` are test-only knobs to exercise the tiled
    path at small sizes.
    """
    n, c = x.shape
    if n == 0:
        # Empty sparse tensor: nothing to normalize (guard divide-by-zero).
        return x

    eps = float(eps)
    w = weight.astype(jnp.float32).reshape(c)
    b = bias.astype(jnp.float32).reshape(c)
    vmem_limit = _vmem_budget()

    if c <= 128:
        return _forward_flat(x, w, b, eps, vmem_limit, block_rows, force_tiled)
    return _forward_wide(x, w, b, eps, vmem_limit, block_rows)


# ---------------------------------------------------------------------------
# Reference & test
# ---------------------------------------------------------------------------
def _reference(x, weight, bias, eps=1e-5):
    xf = x.astype(jnp.float32)
    mean = jnp.mean(xf, axis=0, keepdims=True)
    var = jnp.mean((xf - mean) ** 2, axis=0, keepdims=True)
    out = (xf - mean) * jax.lax.rsqrt(var + eps)
    return (out * weight.reshape(1, -1) + bias.reshape(1, -1)).astype(x.dtype)


if __name__ == "__main__":
    key = jax.random.PRNGKey(0)
    k1, k2 = jax.random.split(key, 2)

    # Case 1: typical Minkowski feature matrix (small C) -> fused fast path.
    # Non-zero mean / non-unit std exercises the cancellation-safe variance.
    n1, c1 = 1000, 8
    x1 = jax.random.normal(k1, (n1, c1), dtype=jnp.float32) * 2.0 + 3.0
    w1 = 1.0 + 0.1 * jnp.arange(c1, dtype=jnp.float32)
    b1 = 0.01 * jnp.arange(c1, dtype=jnp.float32)
    ref1 = _reference(x1, w1, b1, eps=1e-5)

    out1 = jax.block_until_ready(minkowski_batch_norm(x1, w1, b1, eps=1e-5))
    assert out1.shape == (n1, c1)
    assert float(jnp.max(jnp.abs(out1 - ref1))) < 2e-3, "fast path mismatch"

    # Case 2: same data through the tiled two-pass path (forced small blocks)
    # to exercise the striped stats kernel, tail masking and the normalize pass.
    out2 = jax.block_until_ready(
        minkowski_batch_norm(x1, w1, b1, eps=1e-5,
                             force_tiled=True, block_rows=16))
    assert float(jnp.max(jnp.abs(out2 - ref1))) < 2e-3, "tiled path mismatch"

    # Case 3: wide-channel path (C > 128, channels on lanes).
    n3, c3 = 300, 200
    x3 = jax.random.normal(k2, (n3, c3), dtype=jnp.float32) - 1.5
    w3 = 0.5 + jnp.arange(c3, dtype=jnp.float32) / c3
    b3 = jnp.linspace(-1.0, 1.0, c3, dtype=jnp.float32)
    ref3 = _reference(x3, w3, b3, eps=1e-5)
    out3 = jax.block_until_ready(
        minkowski_batch_norm(x3, w3, b3, eps=1e-5, block_rows=64))
    assert out3.shape == (n3, c3)
    assert float(jnp.max(jnp.abs(out3 - ref3))) < 2e-3, "wide path mismatch"

    print("KERNEL_OK")
</pallas_src>

<mosaic_0001>
module attributes {stable_mosaic.version = 11 : i64} {
  func.func @_fused_flat_kernel(%arg0: memref<64x128xf32, #tpu.memory_space<vmem>>, %arg1: memref<1x128xf32, #tpu.memory_space<vmem>>, %arg2: memref<1x128xf32, #tpu.memory_space<vmem>>, %arg3: memref<64x128xf32, #tpu.memory_space<vmem>>) attributes {dimension_semantics = [], scalar_prefetch = 0 : i64, scratch_operands = 0 : i64, tpu.core_type = #tpu.core_type<tc>} {
    %c0 = arith.constant 0 : index
    %c0_0 = arith.constant 0 : index
    %0 = vector.load %arg0[%c0, %c0_0] : memref<64x128xf32, #tpu.memory_space<vmem>>, vector<64x128xf32>
    %1 = tpu.iota {dimensions = array<i32: 0>} : vector<64x128xi32>
    %2 = tpu.iota {dimensions = array<i32: 1>} : vector<64x128xi32>
    %c62_i32 = arith.constant 62 : i32
    %3 = vector.broadcast %c62_i32 : i32 to vector<64x128xi32>
    %4 = arith.cmpi slt, %1, %3 : vector<64x128xi32>
    %c62_i32_1 = arith.constant 62 : i32
    %5 = vector.broadcast %c62_i32_1 : i32 to vector<64x128xi32>
    %6 = arith.cmpi eq, %1, %5 : vector<64x128xi32>
    %c64_i32 = arith.constant 64 : i32
    %7 = vector.broadcast %c64_i32 : i32 to vector<64x128xi32>
    %8 = arith.cmpi slt, %2, %7 : vector<64x128xi32>
    %9 = arith.andi %6, %8 : vector<64x128xi1>
    %10 = arith.ori %4, %9 : vector<64x128xi1>
    %11 = tpu.iota {dimensions = array<i32: 0>} : vector<128x128xi32>
    %c8_i32 = arith.constant 8 : i32
    %c0_i32 = arith.constant 0 : i32
    %12 = arith.cmpi eq, %c8_i32, %c0_i32 : i32
    %c1_i32 = arith.constant 1 : i32
    %13 = arith.select %12, %c1_i32, %c8_i32 : i32
    %14 = vector.broadcast %13 : i32 to vector<128x128xi32>
    %15 = arith.remsi %11, %14 : vector<128x128xi32>
    %c0_i32_2 = arith.constant 0 : i32
    %16 = vector.broadcast %c0_i32_2 : i32 to vector<128x128xi32>
    %17 = arith.cmpi ne, %15, %16 : vector<128x128xi32>
    %c0_i32_3 = arith.constant 0 : i32
    %18 = vector.broadcast %c0_i32_3 : i32 to vector<128x128xi32>
    %19 = arith.cmpi slt, %15, %18 : vector<128x128xi32>
    %c0_i32_4 = arith.constant 0 : i32
    %20 = arith.cmpi slt, %13, %c0_i32_4 : i32
    %21 = vector.broadcast %20 : i1 to vector<128x128xi1>
    %22 = vector.broadcast %21 : vector<128x128xi1> to vector<128x128xi1>
    %23 = arith.xori %19, %22 : vector<128x128xi1>
    %24 = arith.andi %23, %17 : vector<128x128xi1>
    %25 = vector.broadcast %13 : i32 to vector<128x128xi32>
    %26 = arith.addi %15, %25 : vector<128x128xi32>
    %27 = arith.select %24, %26, %15 : vector<128x128xi1>, vector<128x128xi32>
    %28 = tpu.iota {dimensions = array<i32: 1>} : vector<128x128xi32>
    %c8_i32_5 = arith.constant 8 : i32
    %c0_i32_6 = arith.constant 0 : i32
    %29 = arith.cmpi eq, %c8_i32_5, %c0_i32_6 : i32
    %c1_i32_7 = arith.constant 1 : i32
    %30 = arith.select %29, %c1_i32_7, %c8_i32_5 : i32
    %31 = vector.broadcast %30 : i32 to vector<128x128xi32>
    %32 = arith.remsi %28, %31 : vector<128x128xi32>
    %c0_i32_8 = arith.constant 0 : i32
    %33 = vector.broadcast %c0_i32_8 : i32 to vector<128x128xi32>
    %34 = arith.cmpi ne, %32, %33 : vector<128x128xi32>
    %c0_i32_9 = arith.constant 0 : i32
    %35 = vector.broadcast %c0_i32_9 : i32 to vector<128x128xi32>
    %36 = arith.cmpi slt, %32, %35 : vector<128x128xi32>
    %c0_i32_10 = arith.constant 0 : i32
    %37 = arith.cmpi slt, %30, %c0_i32_10 : i32
    %38 = vector.broadcast %37 : i1 to vector<128x128xi1>
    %39 = vector.broadcast %38 : vector<128x128xi1> to vector<128x128xi1>
    %40 = arith.xori %36, %39 : vector<128x128xi1>
    %41 = arith.andi %40, %34 : vector<128x128xi1>
    %42 = vector.broadcast %30 : i32 to vector<128x128xi32>
    %43 = arith.addi %32, %42 : vector<128x128xi32>
    %44 = arith.select %41, %43, %32 : vector<128x128xi1>, vector<128x128xi32>
    %45 = arith.cmpi eq, %27, %44 : vector<128x128xi32>
    %46 = arith.extui %45 : vector<128x128xi1> to vector<128x128xi32>
    %47 = arith.sitofp %46 : vector<128x128xi32> to vector<128x128xf32>
    %cst = arith.constant dense<0.000000e+00> : vector<128xf32>
    %48 = vector.multi_reduction <add>, %0, %cst [0] : vector<64x128xf32> to vector<128xf32>
    %49 = vector.shape_cast %48 : vector<128xf32> to vector<1x128xf32>
    %cst_11 = arith.constant dense<0.000000e+00> : vector<1x128xf32>
    %50 = tpu.matmul %49, %47, %cst_11 {dimension_numbers = #tpu.dot_dimension_numbers<[1], [0], [0], [1], [0, 0, 1, 1], [], []>} : vector<1x128xf32>, vector<128x128xf32>, vector<1x128xf32> -> vector<1x128xf32>
    %cst_12 = arith.constant 1.000000e-03 : f32
    %51 = vector.broadcast %cst_12 : f32 to vector<1x128xf32>
    %52 = arith.mulf %50, %51 : vector<1x128xf32>
    %53 = vector.broadcast %52 : vector<1x128xf32> to vector<64x128xf32>
    %54 = arith.subf %0, %53 : vector<64x128xf32>
    %cst_13 = arith.constant 0.000000e+00 : f32
    %55 = vector.broadcast %cst_13 : f32 to vector<64x128xf32>
    %56 = arith.select %10, %54, %55 : vector<64x128xi1>, vector<64x128xf32>
    %57 = arith.mulf %56, %56 : vector<64x128xf32>
    %cst_14 = arith.constant dense<0.000000e+00> : vector<128xf32>
    %58 = vector.multi_reduction <add>, %57, %cst_14 [0] : vector<64x128xf32> to vector<128xf32>
    %59 = vector.shape_cast %58 : vector<128xf32> to vector<1x128xf32>
    %cst_15 = arith.constant dense<0.000000e+00> : vector<1x128xf32>
    %60 = tpu.matmul %59, %47, %cst_15 {dimension_numbers = #tpu.dot_dimension_numbers<[1], [0], [0], [1], [0, 0, 1, 1], [], []>} : vector<1x128xf32>, vector<128x128xf32>, vector<1x128xf32> -> vector<1x128xf32>
    %cst_16 = arith.constant 1.000000e-03 : f32
    %61 = vector.broadcast %cst_16 : f32 to vector<1x128xf32>
    %62 = arith.mulf %60, %61 : vector<1x128xf32>
    %c0_17 = arith.constant 0 : index
    %c0_18 = arith.constant 0 : index
    %63 = vector.load %arg1[%c0_17, %c0_18] : memref<1x128xf32, #tpu.memory_space<vmem>>, vector<1x128xf32>
    %cst_19 = arith.constant 9.99999974E-6 : f32
    %64 = vector.broadcast %cst_19 : f32 to vector<1x128xf32>
    %65 = arith.addf %62, %64 : vector<1x128xf32>
    %66 = math.rsqrt %65 : vector<1x128xf32>
    %67 = arith.mulf %63, %66 : vector<1x128xf32>
    %c0_20 = arith.constant 0 : index
    %c0_21 = arith.constant 0 : index
    %68 = vector.load %arg2[%c0_20, %c0_21] : memref<1x128xf32, #tpu.memory_space<vmem>>, vector<1x128xf32>
    %69 = arith.mulf %52, %67 : vector<1x128xf32>
    %70 = arith.subf %68, %69 : vector<1x128xf32>
    %71 = vector.broadcast %67 : vector<1x128xf32> to vector<64x128xf32>
    %72 = arith.mulf %0, %71 : vector<64x128xf32>
    %73 = vector.broadcast %70 : vector<1x128xf32> to vector<64x128xf32>
    %74 = arith.addf %72, %73 : vector<64x128xf32>
    %c0_22 = arith.constant 0 : index
    %c0_23 = arith.constant 0 : index
    %75 = vector.load %arg3[%c0_22, %c0_23] : memref<64x128xf32, #tpu.memory_space<vmem>>, vector<64x128xf32>
    tpu.vector_store %arg3[%c0_22, %c0_23], %74 {strides = array<i32>} : memref<64x128xf32, #tpu.memory_space<vmem>>, vector<64x128xf32>,
    return
  }
}

</mosaic_0001>

<bundles_post_ra>
// kernel: tpu_custom_call.1
= control target key start
LH: loop header
LB: loop body
LE: loop exit
PB: predicated region body
PF: predicated region fallthrough
CT: control target
= control target key end

     0   :  { %8 = vsyncpa [#allocation3], 0  ;;  %s1103_s0 = inlined_call_operand.hbm [shape: f32[64,128], index: 0, kind: input, shape index: {}]   ;;  %s1104_s1 = inlined_call_operand.vmem [shape: f32[1,128], index: 1, kind: input, shape index: {}]   ;;  %s1105_s2 = inlined_call_operand.vmem [shape: f32[1,128], index: 2, kind: input, shape index: {}]   ;;  %s1106_s3 = inlined_call_operand.hbm [shape: f32[64,128], index: 3, kind: output, shape index: {}]  }
   0x1   :  { %9 = vsyncpa [#allocation4], 0  ;;  %s855_s12 = smov [#allocation2]   ;;  %s807_s16 = scalar_lea.hbm %s1103_s0, 1024 }
   0x2   :  { %s15_s13 = sshll.u32 %s855_s12, 4  ;;  %p808_p0 = scmp.ne.s32.totalorder %s1103_s0, %s807_s16  ;;  %s16_s13 = int_to_ptr.vmem [resolvable:$true] %s15_s13 }
   0x3   :  { %p811_p1 = scmp.lt.u32.totalorder %s807_s16, %s1103_s0 }
   0x5   :  { %p813_p2 = pnand %p811_p1, %p808_p0 }
   0x7   :  { %816 = shalt.err (!%p813_p2)
}
   0x8   :  { %s817_s21 = scalar_lea.vmem %s16_s13, 1024  ;;  %p822_p4 = scmp.lt.s32.totalorder %s16_s13, %s16_s13 }
   0x9   :  { %p818_p3 = scmp.ne.s32.totalorder %s16_s13, %s817_s21  ;;  %p823_p5 = scmp.lt.s32.totalorder %s817_s21, %s817_s21 }
   0xb   :  { %p824_p6 = por %p823_p5, %p822_p4 }
   0xd   :  { %p825_p7 = pnand %p824_p6, %p818_p3 }
   0xf   :  { %828 = shalt.err (!%p825_p7)
}
  0x10   :  { %s856_s22 = smov 128   ;;  %s857_s23 = smov 8  }
  0x11   :  { %21 = dma.hbm_to_vmem [thread:$0]  %s1103_s0, 1024, %s16_s13, [#allocation3], %s856_s22, %s856_s22, %s857_s23  }
  0x12   :  { %851 = dma.done.wait [#allocation3], 1024  }
  0x13   :  { %852 = vsyncadd [#allocation3], 4294966272  ;;  %v37_v0 = vlaneseq  ;;  %v858_v1 = vmov 0.0|0.0   ;;  %vm859_vm0 = vmmov 0   ;;  %v860_v4 = vmov 0.0   ;;  %v938_v25 = vld [vmem:[#allocation2] sm:$0xff] }
  0x14   :  { %749 = vmatprep.subr.bf16.mxu0 %v858_v1  ;;  %773 = vmatprep.subr.bf16.mxu1 %v858_v1  ;;  %v861_v21 = vmov 1.0|1.0   ;;  %v940_v26 = vld [vmem:[#allocation2 + $0x8] sm:$0xff]  ;;  %v954_v30 = vld [vmem:[#allocation2 + $0x10] sm:$0xff]  ;;  %v975_v35 = vld [vmem:[#allocation2 + $0x18] sm:$0xff]  ;;  %s862_s29 = smov [#allocation5]  }
  0x15   :  { %v900_v2 = vshrl.u32 %v37_v0, 7  ;;  %v902_v3 = vand.u32 127, %v37_v0  ;;  %711 = vmatprep.mubr.msk.f32.mxu0 %vm859_vm0, %v860_v4  ;;  %746 = vmatprep.mubr.msk.f32.mxu1 %vm859_vm0, %v860_v4  ;;  %v341_v31 = vadd.f32 %v940_v26, %v938_v25  ;;  %v981_v40 = vld [vmem:[#allocation2 + $0x20] sm:$0xff]  ;;  %v998_v45 = vld [vmem:[#allocation2 + $0x28] sm:$0xff]  ;;  %v1007_v50 = vld [vmem:[#allocation2 + $0x30] sm:$0xff] }
  0x16   :  { %v1019_v55 = vld [vmem:[#allocation2 + $0x38] sm:$0xff]  ;;  %v541_v56 = vld [vmem:[%s1105_s2] sm:$0x1] }
  0x17   :  { %v39_v5 = vadd.s32 8, %v900_v2  ;;  %v93_v6 = vand.u32 7, %v900_v2  ;;  %v907_v7 = vand.u32 7, %v902_v3  ;;  %v40_v8 = vadd.s32 16, %v900_v2 }
  0x18   :  { %v41_v9 = vadd.s32 24, %v900_v2  ;;  %v42_v10 = vadd.s32 32, %v900_v2  ;;  %v43_v11 = vadd.s32 40, %v900_v2  ;;  %v44_v15 = vadd.s32 48, %v900_v2 }
  0x19   :  { %v100_v12 = vand.u32 7, %v39_v5  ;;  %vm293_vm1 = vcmp.eq.s32.totalorder %v93_v6, %v907_v7  ;;  %v107_v13 = vand.u32 7, %v40_v8  ;;  %v916_v16 = vadd.s32 56, %v900_v2 }
  0x1a   :  { %v114_v14 = vand.u32 7, %v41_v9  ;;  %v121_v18 = vand.u32 7, %v42_v10  ;;  %v128_v19 = vand.u32 7, %v43_v11  ;;  %v135_v22 = vand.u32 7, %v44_v15 }
  0x1b   :  { %vm294_vm2 = vcmp.eq.s32.totalorder %v100_v12, %v907_v7  ;;  %vm920_vm3 = vcmp.eq.s32.totalorder %v107_v13, %v907_v7  ;;  %v142_v23 = vand.u32 7, %v916_v16  ;;  %v81_v24 = vadd.s32 64, %v900_v2 }
  0x1c   :  { %vm750_vm4 = vmpackc.low %vm294_vm2, %vm293_vm1  ;;  %vm925_vm5 = vcmp.eq.s32.totalorder %v114_v14, %v907_v7  ;;  %vm944_vm7 = vcmp.eq.s32.totalorder %v121_v18, %v907_v7  ;;  %vm949_vm8 = vcmp.eq.s32.totalorder %v128_v19, %v907_v7  ;;  %v82_v29 = vadd.s32 72, %v900_v2 }
  0x1d   :  { %751 = vmatpush3.bf16.msk.msra.mxu0 %vm750_vm4, %v861_v21  ;;  %775 = vmatpush3.bf16.msk.msra.mxu1 %vm750_vm4, %v861_v21  ;;  %vm753_vm6 = vmpackc.low %vm925_vm5, %vm920_vm3  ;;  %vm966_vm10 = vcmp.eq.s32.totalorder %v135_v22, %v907_v7  ;;  %vm971_vm11 = vcmp.eq.s32.totalorder %v142_v23, %v907_v7  ;;  %v149_v34 = vand.u32 7, %v81_v24  ;;  %v83_v37 = vadd.s32 80, %v900_v2 }
  0x1e   :  { %752 = vmatprep.subr.bf16.mxu0 %v858_v1  ;;  %776 = vmatprep.subr.bf16.mxu1 %v858_v1  ;;  %vm756_vm9 = vmpackc.low %vm949_vm8, %vm944_vm7  ;;  %v156_v36 = vand.u32 7, %v82_v29  ;;  %v84_v38 = vadd.s32 88, %v900_v2  ;;  %v342_v39 = vadd.f32 %v341_v31, %v954_v30  ;;  %v85_v43 = vadd.s32 96, %v900_v2 }
  0x1f   :  { %vm759_vm12 = vmpackc.low %vm971_vm11, %vm966_vm10  ;;  %vm992_vm13 = vcmp.eq.s32.totalorder %v149_v34, %v907_v7  ;;  %v86_v44 = vadd.s32 104, %v900_v2  ;;  %v163_v47 = vand.u32 7, %v83_v37  ;;  %v87_v53 = vadd.s32 112, %v900_v2 }
  0x20   :  { %v343_v41 = vadd.f32 %v342_v39, %v975_v35  ;;  %vm1002_vm14 = vcmp.eq.s32.totalorder %v156_v36, %v907_v7  ;;  %v170_v48 = vand.u32 7, %v84_v38  ;;  %v177_v52 = vand.u32 7, %v85_v43 }
  0x21   :  { %754 = vmatpush3.bf16.msk.msra.mxu0 %vm753_vm6, %v861_v21  ;;  %778 = vmatpush3.bf16.msk.msra.mxu1 %vm753_vm6, %v861_v21  ;;  %vm762_vm15 = vmpackc.low %vm1002_vm14, %vm992_vm13  ;;  %v88_v54 = vadd.s32 120, %v900_v2  ;;  %vm1023_vm0 = vcmp.eq.s32.totalorder %v163_v47, %v907_v7  ;;  %v184_v58 = vand.u32 7, %v86_v44  ;;  %v191_v61 = vand.u32 7, %v87_v53 }
  0x22   :  { %755 = vmatprep.subr.bf16.mxu0 %v858_v1  ;;  %779 = vmatprep.subr.bf16.mxu1 %v858_v1  ;;  %v344_v49 = vadd.f32 %v343_v41, %v981_v40  ;;  %vm1028_vm1 = vcmp.eq.s32.totalorder %v170_v48, %v907_v7  ;;  %vm1043_vm3 = vcmp.eq.s32.totalorder %v177_v52, %v907_v7  ;;  %vm64_vm10 = vcmp.lt.s32.totalorder %v902_v3, 64  ;;  %v537_v52 = vld [vmem:[%s1104_s1] sm:$0x1]  ;;  %s585_s1 = sshll.u32 %s862_s29, 4  ;;  %s586_s1 = int_to_ptr.vmem [resolvable:$true] %s585_s1 }
  0x23   :  { %vm765_vm2 = vmpackc.low %vm1028_vm1, %vm1023_vm0  ;;  %vm306_vm4 = vcmp.eq.s32.totalorder %v184_v58, %v907_v7  ;;  %v198_v63 = vand.u32 7, %v88_v54  ;;  %vm307_vm6 = vcmp.eq.s32.totalorder %v191_v61, %v907_v7  ;;  %vm55_vm11 = vcmp.lt.s32.totalorder %v916_v16, 62  ;;  %s829_s2 = scalar_lea.vmem %s586_s1, 1024  ;;  %p834_p9 = scmp.lt.s32.totalorder %s586_s1, %s586_s1 }
  0x24   :  { %v345_v51 = vadd.f32 %v344_v49, %v998_v45  ;;  %vm768_vm5 = vmpackc.low %vm306_vm4, %vm1043_vm3  ;;  %p830_p8 = scmp.ne.s32.totalorder %s586_s1, %s829_s2  ;;  %p835_p10 = scmp.lt.s32.totalorder %s829_s2, %s829_s2 }
  0x25   :  { %757 = vmatpush3.bf16.msk.msra.mxu0 %vm756_vm9, %v861_v21  ;;  %781 = vmatpush3.bf16.msk.msra.mxu1 %vm756_vm9, %v861_v21  ;;  %vm308_vm7 = vcmp.eq.s32.totalorder %v198_v63, %v907_v7  ;;  %v427_v7 = vsub.s32 0, %v900_v2  ;;  %vm63_vm9 = vcmp.eq.s32.totalorder %v916_v16, 62 }
  0x26   :  { %758 = vmatprep.subr.bf16.mxu0 %v858_v1  ;;  %782 = vmatprep.subr.bf16.mxu1 %v858_v1  ;;  %v346_v59 = vadd.f32 %v345_v51, %v1007_v50  ;;  %vm771_vm8 = vmpackc.low %vm308_vm7, %vm307_vm6  ;;  %p836_p11 = por %p835_p10, %p834_p9 }
  0x28   :  { %v347_v60 = vadd.f32 %v346_v59, %v1019_v55  ;;  %p837_p12 = pnand %p836_p11, %p830_p8 }
  0x29   :  { %760 = vmatpush3.bf16.msk.msra.mxu0 %vm759_vm12, %v861_v21  ;;  %784 = vmatpush3.bf16.msk.msra.mxu1 %vm759_vm12, %v861_v21  ;;  %vm72_vm12 = vmand %vm63_vm9, %vm64_vm10 }
  0x2a   :  { %761 = vmatprep.subr.bf16.mxu0 %v858_v1  ;;  %785 = vmatprep.subr.bf16.mxu1 %v858_v1  ;;  %v348_v0 = vrot.slane %v347_v60, 4  ;;  %vm80_vm13 = vmor %vm55_vm11, %vm72_vm12 }
  0x2c   :  { %v349_v4 = vadd.f32 %v348_v0, %v347_v60 }
  0x2d   :  { %763 = vmatpush3.bf16.msk.msra.mxu0 %vm762_vm15, %v861_v21  ;;  %787 = vmatpush3.bf16.msk.msra.mxu1 %vm762_vm15, %v861_v21 }
  0x2e   :  { %764 = vmatprep.subr.bf16.mxu0 %v858_v1  ;;  %788 = vmatprep.subr.bf16.mxu1 %v858_v1  ;;  %v350_v5 = vrot.slane %v349_v4, 2 }
  0x30   :  { %v351_v6 = vadd.f32 %v350_v5, %v349_v4 }
  0x31   :  { %766 = vmatpush3.bf16.msk.msra.mxu0 %vm765_vm2, %v861_v21  ;;  %790 = vmatpush3.bf16.msk.msra.mxu1 %vm765_vm2, %v861_v21 }
  0x32   :  { %767 = vmatprep.subr.bf16.mxu0 %v858_v1  ;;  %791 = vmatprep.subr.bf16.mxu1 %v858_v1  ;;  %v352_v8 = vrot.slane %v351_v6, 1 }
  0x34   :  { %v353_v9 = vadd.f32 %v352_v8, %v351_v6 }
  0x35   :  { %769 = vmatpush3.bf16.msk.msra.mxu0 %vm768_vm5, %v861_v21  ;;  %793 = vmatpush3.bf16.msk.msra.mxu1 %vm768_vm5, %v861_v21 }
  0x36   :  { %770 = vmatprep.subr.bf16.mxu0 %v858_v1  ;;  %794 = vmatprep.subr.bf16.mxu1 %v858_v1 }
  0x39   :  { %772 = vmatpush3.bf16.msk.msra.mxu0 %vm771_vm8, %v861_v21  ;;  %796 = vmatpush3.bf16.msk.msra.mxu1 %vm771_vm8, %v861_v21 }
  0x3c   :  { %712 = vmatmul.mubr.f32.vlgmr.msra.gmra.mrb[0].mxu0 %v353_v9 }
 0x10f   :  { %v420_v10 = vpop.f32.mrb[0].mxu0 }
 0x110   :  { %v424_v11 = vmul.f32 0.001, %v420_v10  ;;  %v713_v12 = vpop.f32.mrb[1].mxu0 }
 0x112   :  { %v428_v13 = vrot.slane %v424_v11, %v427_v7 }
 0x114   :  { %v429_v14 = vsub.f32 %v938_v25, %v428_v13  ;;  %v430_v15 = vsub.f32 %v940_v26, %v428_v13  ;;  %v431_v17 = vsub.f32 %v954_v30, %v428_v13  ;;  %v432_v1 = vsub.f32 %v975_v35, %v428_v13 }
 0x115   :  { %v433_v2 = vsub.f32 %v981_v40, %v428_v13  ;;  %v434_v22 = vsub.f32 %v998_v45, %v428_v13  ;;  %v436_v27 = vsub.f32 %v1019_v55, %v428_v13  ;;  %v435_v3 = vsub.f32 %v1007_v50, %v428_v13 }
 0x116   :  { %v445_v18 = vmul.f32 %v429_v14, %v429_v14  ;;  %v446_v19 = vmul.f32 %v430_v15, %v430_v15  ;;  %v447_v20 = vmul.f32 %v431_v17, %v431_v17  ;;  %v448_v23 = vmul.f32 %v432_v1, %v432_v1 }
 0x117   :  { %v449_v28 = vmul.f32 %v433_v2, %v433_v2  ;;  %v450_v31 = vmul.f32 %v434_v22, %v434_v22  ;;  %v444_v33 = vsel %vm80_vm13, %v436_v27, 0.0  ;;  %v451_v34 = vmul.f32 %v435_v3, %v435_v3 }
 0x118   :  { %v453_v21 = vadd.f32 %v446_v19, %v445_v18  ;;  %v452_v37 = vmul.f32 %v444_v33, %v444_v33 }
 0x11a   :  { %v454_v24 = vadd.f32 %v453_v21, %v447_v20 }
 0x11c   :  { %v455_v29 = vadd.f32 %v454_v24, %v448_v23 }
 0x11e   :  { %v456_v32 = vadd.f32 %v455_v29, %v449_v28 }
 0x120   :  { %v457_v36 = vadd.f32 %v456_v32, %v450_v31 }
 0x122   :  { %v458_v38 = vadd.f32 %v457_v36, %v451_v34 }
 0x124   :  { %v459_v16 = vadd.f32 %v458_v38, %v452_v37 }
 0x126   :  { %v460_v39 = vrot.slane %v459_v16, 4 }
 0x128   :  { %v461_v41 = vadd.f32 %v460_v39, %v459_v16 }
 0x12a   :  { %v462_v42 = vrot.slane %v461_v41, 2 }
 0x12c   :  { %v463_v43 = vadd.f32 %v462_v42, %v461_v41 }
 0x12e   :  { %v464_v44 = vrot.slane %v463_v43, 1 }
 0x130   :  { %v465_v46 = vadd.f32 %v464_v44, %v463_v43 }
 0x132   :  { %747 = vmatmul.mubr.f32.vlgmr.msra.gmra.mrb[0].mxu1 %v465_v46 }
 0x205   :  { %v532_v47 = vpop.f32.mrb[0].mxu1 }
 0x206   :  { %v536_v48 = vmul.f32 0.001, %v532_v47  ;;  %v748_v49 = vpop.f32.mrb[1].mxu1 }
 0x208   :  { %v538_v51 = vadd.f32 1e-05, %v536_v48 }
 0x20a   :  { %805 = vrsqrt.f32 %v538_v51 }
 0x214   :  { %v806_v53 = vpop.eup %805 }
 0x215   :  { %v540_v54 = vmul.f32 %v806_v53, %v537_v52 }
 0x217   :  { %v542_v57 = vmul.f32 %v540_v54, %v424_v11  ;;  %v548_v58 = vrot.slane %v540_v54, %v427_v7 }
 0x219   :  { %v543_v59 = vsub.f32 %v541_v56, %v542_v57  ;;  %v550_v60 = vmul.f32 %v548_v58, %v938_v25  ;;  %v551_v62 = vmul.f32 %v548_v58, %v940_v26  ;;  %v552_v63 = vmul.f32 %v548_v58, %v954_v30 }
 0x21a   :  { %v553_v0 = vmul.f32 %v548_v58, %v975_v35  ;;  %v554_v4 = vmul.f32 %v548_v58, %v981_v40  ;;  %v555_v5 = vmul.f32 %v548_v58, %v998_v45  ;;  %v556_v6 = vmul.f32 %v548_v58, %v1007_v50 }
 0x21b   :  { %v562_v61 = vrot.slane %v543_v59, %v427_v7  ;;  %v557_v8 = vmul.f32 %v548_v58, %v1019_v55 }
 0x21d   :  { %v564_v9 = vadd.f32 %v562_v61, %v550_v60  ;;  %v565_v10 = vadd.f32 %v562_v61, %v551_v62  ;;  %v566_v25 = vadd.f32 %v562_v61, %v552_v63  ;;  %v567_v7 = vadd.f32 %v562_v61, %v553_v0 }
 0x21e   :  { %v568_v11 = vadd.f32 %v562_v61, %v554_v4  ;;  %v569_v26 = vadd.f32 %v562_v61, %v555_v5  ;;  %v570_v12 = vadd.f32 %v562_v61, %v556_v6  ;;  %v571_v30 = vadd.f32 %v562_v61, %v557_v8 }
 0x21f   :  { %572 = vst [vmem:[#allocation5] sm:$0xff] %v564_v9  ;;  %573 = vst [vmem:[#allocation5 + $0x8] sm:$0xff] %v565_v10 }
 0x220   :  { %574 = vst [vmem:[#allocation5 + $0x10] sm:$0xff] %v566_v25  ;;  %575 = vst [vmem:[#allocation5 + $0x18] sm:$0xff] %v567_v7 }
 0x221   :  { %576 = vst [vmem:[#allocation5 + $0x20] sm:$0xff] %v568_v11  ;;  %577 = vst [vmem:[#allocation5 + $0x28] sm:$0xff] %v569_v26 }
 0x222   :  { %578 = vst [vmem:[#allocation5 + $0x30] sm:$0xff] %v570_v12  ;;  %579 = vst [vmem:[#allocation5 + $0x38] sm:$0xff] %v571_v30 }
 0x223   :  { %840 = shalt.err (!%p837_p12)
}
 0x224   :  { %s841_s5 = scalar_lea.hbm %s1106_s3, 1024 }
 0x225   :  { %p842_p13 = scmp.ne.s32.totalorder %s1106_s3, %s841_s5  ;;  %p845_p0 = scmp.lt.u32.totalorder %s841_s5, %s1106_s3 }
 0x227   :  { %p847_p1 = pnand %p845_p0, %p842_p13 }
 0x229   :  { %850 = shalt.err (!%p847_p1)
}
 0x22a   :  { %591 = dma.vmem_to_hbm [thread:$0]  %s586_s1, 1024, %s1106_s3, [#allocation4], %s856_s22, %s856_s22, %s857_s23  }
 0x22b   :  { %853 = dma.done.wait [#allocation4], 1024  }
 0x22c   :  { %854 = vsyncadd [#allocation4], 4294966272 }
 0x22d   :  { %595 = vsyncpa [#allocation3], 1 }
 0x22e   :  { %596 = vsyncpa [#allocation4], 1 }

</bundles_post_ra>
